<compile_context>
chip_gen: v7x
topology: tpu7x:2x2x1
jax: 0.10.0
libtpu: 0.0.40
codegen_flags: <defaults>
</compile_context>

<pallas_src>
import jax
import jax.numpy as jnp
import numpy as np
from jax import lax
from jax.experimental import pallas as pl
from jax.experimental.pallas import tpu as pltpu


def _make_mutual_attn_kernel(num_heads, c, hw):
    c_head = c // num_heads

    def kernel(temp_ref, x_ref, y_ref, wq_ref, wk_ref, wv_ref, wp_ref, o_ref):
        x = x_ref[0]          # (c, hw)  bf16
        y = y_ref[0]          # (c, hw)  bf16
        wq = wq_ref[...]      # (c, c)   bf16
        wk = wk_ref[...]      # (c, c)   bf16
        wv = wv_ref[...]      # (c, c)   bf16
        wp = wp_ref[...]      # (c, c)   bf16

        # 1x1 convs (bias=False) == full channel-mixing matmuls, f32 accumulation.
        q = jnp.dot(wq, x, preferred_element_type=jnp.float32)   # (c, hw) f32
        k = jnp.dot(wk, y, preferred_element_type=jnp.float32)   # (c, hw) f32
        v = jnp.dot(wv, y, preferred_element_type=jnp.float32)   # (c, hw) f32

        qh = q.reshape(num_heads, c_head, hw)
        kh = k.reshape(num_heads, c_head, hw)
        vh = v.reshape(num_heads, c_head, hw)

        # torch.nn.functional.normalize(dim=-1): x / max(||x||, 1e-12)
        #   == x * rsqrt(max(||x||^2, 1e-24))   (rsqrt goes to the EUP slot)
        eps2 = jnp.float32(1e-24)
        qn = qh * lax.rsqrt(
            jnp.maximum(jnp.sum(qh * qh, axis=-1, keepdims=True), eps2))
        kn = kh * lax.rsqrt(
            jnp.maximum(jnp.sum(kh * kh, axis=-1, keepdims=True), eps2))

        # attn = (q @ k^T) * temperature   (batched over heads)
        scores = lax.dot_general(
            qn.astype(jnp.bfloat16), kn.astype(jnp.bfloat16),
            (((2,), (2,)), ((0,), (0,))),
            preferred_element_type=jnp.float32)        # (heads, c_head, c_head)
        scores = scores * temp_ref[...]                # (heads, 1, 1) broadcast

        # softmax over last dim (f32; reciprocal on the EUP fast path)
        scores = scores - jnp.max(scores, axis=-1, keepdims=True)
        e = jnp.exp(scores)
        p = e * pl.reciprocal(jnp.sum(e, axis=-1, keepdims=True), approx=True)

        # out = attn @ v   (batched over heads)
        out_h = lax.dot_general(
            p.astype(jnp.bfloat16), vh.astype(jnp.bfloat16),
            (((2,), (1,)), ((0,), (0,))),
            preferred_element_type=jnp.float32)        # (heads, c_head, hw)

        out_all = out_h.reshape(c, hw)

        # project_out: one canonical (c,c)@(c,hw) matmul, f32 accumulation.
        o_ref[0] = jnp.dot(wp, out_all.astype(jnp.bfloat16),
                           preferred_element_type=jnp.float32)

    return kernel


def mutual_attention(x, y, wq, wk, wv, wp, temperature, num_heads):
    """x, y: (b, c, h, w) float32; w*: (c, c); temperature: (num_heads,)."""
    b, c, h, w = x.shape
    assert c % num_heads == 0, "num_heads must divide embbed_dim"
    hw = h * w

    # bf16 MXU operands (halves HBM/VMEM traffic); f32 accumulation in-kernel.
    x3 = x.reshape(b, c, hw).astype(jnp.bfloat16)
    y3 = y.reshape(b, c, hw).astype(jnp.bfloat16)
    wqb = wq.astype(jnp.bfloat16)
    wkb = wk.astype(jnp.bfloat16)
    wvb = wv.astype(jnp.bfloat16)
    wpb = wp.astype(jnp.bfloat16)
    temp = temperature.reshape(num_heads, 1, 1).astype(jnp.float32)

    kernel = _make_mutual_attn_kernel(num_heads, c, hw)

    out = pl.pallas_call(
        kernel,
        out_shape=jax.ShapeDtypeStruct((b, c, hw), jnp.float32),
        grid_spec=pltpu.PrefetchScalarGridSpec(
            num_scalar_prefetch=0,
            grid=(b,),
            in_specs=[
                pl.BlockSpec((num_heads, 1, 1), lambda bi: (0, 0, 0)),  # temperature
                pl.BlockSpec((1, c, hw), lambda bi: (bi, 0, 0)),        # x
                pl.BlockSpec((1, c, hw), lambda bi: (bi, 0, 0)),        # y
                pl.BlockSpec((c, c), lambda bi: (0, 0)),                # Wq (resident)
                pl.BlockSpec((c, c), lambda bi: (0, 0)),                # Wk (resident)
                pl.BlockSpec((c, c), lambda bi: (0, 0)),                # Wv (resident)
                pl.BlockSpec((c, c), lambda bi: (0, 0)),                # Wp (resident)
            ],
            out_specs=pl.BlockSpec((1, c, hw), lambda bi: (bi, 0, 0)),
        ),
        compiler_params=pltpu.CompilerParams(
            dimension_semantics=("parallel",)),
    )(temp, x3, y3, wqb, wkb, wvb, wpb)

    return out.reshape(b, c, h, w)


def mutual_attention_ref(x, y, wq, wk, wv, wp, temperature, num_heads):
    """Pure-JAX f32 reference matching the PyTorch forward."""
    b, c, h, w = x.shape
    hw = h * w
    ch = c // num_heads
    X = x.reshape(b, c, hw)
    Y = y.reshape(b, c, hw)
    q = jnp.einsum('oc,bcn->bon', wq, X).reshape(b, num_heads, ch, hw)
    k = jnp.einsum('oc,bcn->bon', wk, Y).reshape(b, num_heads, ch, hw)
    v = jnp.einsum('oc,bcn->bon', wv, Y).reshape(b, num_heads, ch, hw)
    q = q / jnp.maximum(jnp.linalg.norm(q, axis=-1, keepdims=True), 1e-12)
    k = k / jnp.maximum(jnp.linalg.norm(k, axis=-1, keepdims=True), 1e-12)
    attn = jnp.einsum('bhcn,bhdn->bhcd', q, k) * temperature[None, :, None, None]
    attn = jax.nn.softmax(attn, axis=-1)
    out = jnp.einsum('bhcd,bhdn->bhcn', attn, v).reshape(b, c, hw)
    out = jnp.einsum('oc,bcn->bon', wp, out)
    return out.reshape(b, c, h, w)


if __name__ == "__main__":
    # Small shapes consistent with the module.
    B, C, H, W = 2, 32, 16, 16
    NUM_HEADS = 4

    key = jax.random.PRNGKey(0)
    kx, ky, kq, kk, kv, kp = jax.random.split(key, 6)

    x = jax.random.normal(kx, (B, C, H, W), dtype=jnp.float32)
    y = jax.random.normal(ky, (B, C, H, W), dtype=jnp.float32)

    # Deterministic parameter init (1x1 conv weights, bias=False) and
    # temperature = ones(num_heads) as in nn.Parameter(torch.ones(...)).
    scale = 1.0 / np.sqrt(C)
    wq = jax.random.normal(kq, (C, C), dtype=jnp.float32) * scale
    wk = jax.random.normal(kk, (C, C), dtype=jnp.float32) * scale
    wv = jax.random.normal(kv, (C, C), dtype=jnp.float32) * scale
    wp = jax.random.normal(kp, (C, C), dtype=jnp.float32) * scale
    temperature = jnp.ones((NUM_HEADS,), dtype=jnp.float32)

    out = mutual_attention(x, y, wq, wk, wv, wp, temperature, NUM_HEADS)
    out = jax.block_until_ready(out)

    ref = mutual_attention_ref(x, y, wq, wk, wv, wp, temperature, NUM_HEADS)
    ref = jax.block_until_ready(ref)

    # bf16 MXU operands (f32 accumulation) loosen the achievable tolerance
    # relative to the pure-f32 reference.
    np.testing.assert_allclose(np.asarray(out), np.asarray(ref),
                               rtol=3e-2, atol=3e-2)
    print("KERNEL_OK")
</pallas_src>

<mosaic_0001>
module attributes {stable_mosaic.version = 11 : i64} {
  func.func @kernel(%arg0: i32, %arg1: memref<4x1x1xf32, #tpu.memory_space<vmem>>, %arg2: memref<1x32x256xbf16, #tpu.memory_space<vmem>>, %arg3: memref<1x32x256xbf16, #tpu.memory_space<vmem>>, %arg4: memref<32x32xbf16, #tpu.memory_space<vmem>>, %arg5: memref<32x32xbf16, #tpu.memory_space<vmem>>, %arg6: memref<32x32xbf16, #tpu.memory_space<vmem>>, %arg7: memref<32x32xbf16, #tpu.memory_space<vmem>>, %arg8: memref<1x32x256xf32, #tpu.memory_space<vmem>>) attributes {dimension_semantics = [#tpu.dimension_semantics<parallel>], iteration_bounds = array<i64: 2>, scalar_prefetch = 0 : i64, scratch_operands = 0 : i64, tpu.core_type = #tpu.core_type<tc>, window_params = [{pipeline_mode = #tpu.pipeline_mode<synchronous>, transform_indices = @transform_0, window_bounds = array<i64: 4, 1, 1>}, {transform_indices = @transform_1, window_bounds = array<i64: 1, 32, 256>}, {transform_indices = @transform_2, window_bounds = array<i64: 1, 32, 256>}, {pipeline_mode = #tpu.pipeline_mode<synchronous>, transform_indices = @transform_3, window_bounds = array<i64: 32, 32>}, {pipeline_mode = #tpu.pipeline_mode<synchronous>, transform_indices = @transform_4, window_bounds = array<i64: 32, 32>}, {pipeline_mode = #tpu.pipeline_mode<synchronous>, transform_indices = @transform_5, window_bounds = array<i64: 32, 32>}, {pipeline_mode = #tpu.pipeline_mode<synchronous>, transform_indices = @transform_6, window_bounds = array<i64: 32, 32>}, {transform_indices = @transform_7, window_bounds = array<i64: 1, 32, 256>}]} {
    %c0 = arith.constant 0 : index
    %c0_0 = arith.constant 0 : index
    %c0_1 = arith.constant 0 : index
    %0 = vector.load %arg2[%c0, %c0_0, %c0_1] : memref<1x32x256xbf16, #tpu.memory_space<vmem>>, vector<1x32x256xbf16>
    %1 = vector.shape_cast %0 : vector<1x32x256xbf16> to vector<32x256xbf16>
    %c0_2 = arith.constant 0 : index
    %c0_3 = arith.constant 0 : index
    %c0_4 = arith.constant 0 : index
    %2 = vector.load %arg3[%c0_2, %c0_3, %c0_4] : memref<1x32x256xbf16, #tpu.memory_space<vmem>>, vector<1x32x256xbf16>
    %3 = vector.shape_cast %2 : vector<1x32x256xbf16> to vector<32x256xbf16>
    %c0_5 = arith.constant 0 : index
    %c0_6 = arith.constant 0 : index
    %4 = vector.load %arg4[%c0_5, %c0_6] : memref<32x32xbf16, #tpu.memory_space<vmem>>, vector<32x32xbf16>
    %c0_7 = arith.constant 0 : index
    %c0_8 = arith.constant 0 : index
    %5 = vector.load %arg5[%c0_7, %c0_8] : memref<32x32xbf16, #tpu.memory_space<vmem>>, vector<32x32xbf16>
    %c0_9 = arith.constant 0 : index
    %c0_10 = arith.constant 0 : index
    %6 = vector.load %arg6[%c0_9, %c0_10] : memref<32x32xbf16, #tpu.memory_space<vmem>>, vector<32x32xbf16>
    %c0_11 = arith.constant 0 : index
    %c0_12 = arith.constant 0 : index
    %7 = vector.load %arg7[%c0_11, %c0_12] : memref<32x32xbf16, #tpu.memory_space<vmem>>, vector<32x32xbf16>
    %cst = arith.constant dense<0.000000e+00> : vector<32x256xf32>
    %8 = tpu.matmul %4, %1, %cst {dimension_numbers = #tpu.dot_dimension_numbers<[1], [0], [0], [1], [0, 0, 1, 1], [], []>} : vector<32x32xbf16>, vector<32x256xbf16>, vector<32x256xf32> -> vector<32x256xf32>
    %cst_13 = arith.constant dense<0.000000e+00> : vector<32x256xf32>
    %9 = tpu.matmul %5, %3, %cst_13 {dimension_numbers = #tpu.dot_dimension_numbers<[1], [0], [0], [1], [0, 0, 1, 1], [], []>} : vector<32x32xbf16>, vector<32x256xbf16>, vector<32x256xf32> -> vector<32x256xf32>
    %cst_14 = arith.constant dense<0.000000e+00> : vector<32x256xf32>
    %10 = tpu.matmul %6, %3, %cst_14 {dimension_numbers = #tpu.dot_dimension_numbers<[1], [0], [0], [1], [0, 0, 1, 1], [], []>} : vector<32x32xbf16>, vector<32x256xbf16>, vector<32x256xf32> -> vector<32x256xf32>
    %11 = vector.shape_cast %8 : vector<32x256xf32> to vector<4x8x256xf32>
    %12 = vector.shape_cast %9 : vector<32x256xf32> to vector<4x8x256xf32>
    %13 = vector.shape_cast %10 : vector<32x256xf32> to vector<4x8x256xf32>
    %14 = arith.mulf %11, %11 : vector<4x8x256xf32>
    %cst_15 = arith.constant dense<0.000000e+00> : vector<4x8xf32>
    %15 = vector.multi_reduction <add>, %14, %cst_15 [2] : vector<4x8x256xf32> to vector<4x8xf32>
    %16 = vector.shape_cast %15 : vector<4x8xf32> to vector<4x8x1xf32>
    %cst_16 = arith.constant 1.000000e-24 : f32
    %17 = vector.broadcast %cst_16 : f32 to vector<4x8x1xf32>
    %18 = arith.maximumf %16, %17 : vector<4x8x1xf32>
    %19 = math.rsqrt %18 : vector<4x8x1xf32>
    %20 = vector.broadcast %19 : vector<4x8x1xf32> to vector<4x8x256xf32>
    %21 = arith.mulf %11, %20 : vector<4x8x256xf32>
    %22 = arith.mulf %12, %12 : vector<4x8x256xf32>
    %cst_17 = arith.constant dense<0.000000e+00> : vector<4x8xf32>
    %23 = vector.multi_reduction <add>, %22, %cst_17 [2] : vector<4x8x256xf32> to vector<4x8xf32>
    %24 = vector.shape_cast %23 : vector<4x8xf32> to vector<4x8x1xf32>
    %cst_18 = arith.constant 1.000000e-24 : f32
    %25 = vector.broadcast %cst_18 : f32 to vector<4x8x1xf32>
    %26 = arith.maximumf %24, %25 : vector<4x8x1xf32>
    %27 = math.rsqrt %26 : vector<4x8x1xf32>
    %28 = vector.broadcast %27 : vector<4x8x1xf32> to vector<4x8x256xf32>
    %29 = arith.mulf %12, %28 : vector<4x8x256xf32>
    %30 = arith.truncf %21 : vector<4x8x256xf32> to vector<4x8x256xbf16>
    %31 = arith.truncf %29 : vector<4x8x256xf32> to vector<4x8x256xbf16>
    %cst_19 = arith.constant dense<0.000000e+00> : vector<4x8x8xf32>
    %32 = tpu.matmul %30, %31, %cst_19 {dimension_numbers = #tpu.dot_dimension_numbers<[2], [2], [1], [1], [0, 0, 0, 1, 1, 1], [0], [0]>} : vector<4x8x256xbf16>, vector<4x8x256xbf16>, vector<4x8x8xf32> -> vector<4x8x8xf32>
    %c0_20 = arith.constant 0 : index
    %c0_21 = arith.constant 0 : index
    %c0_22 = arith.constant 0 : index
    %33 = vector.load %arg1[%c0_20, %c0_21, %c0_22] : memref<4x1x1xf32, #tpu.memory_space<vmem>>, vector<4x1x1xf32>
    %34 = vector.broadcast %33 : vector<4x1x1xf32> to vector<4x8x8xf32>
    %35 = arith.mulf %32, %34 : vector<4x8x8xf32>
    %cst_23 = arith.constant dense<0xFF800000> : vector<4x8xf32>
    %36 = vector.multi_reduction <maximumf>, %35, %cst_23 [2] : vector<4x8x8xf32> to vector<4x8xf32>
    %37 = vector.shape_cast %36 : vector<4x8xf32> to vector<4x8x1xf32>
    %38 = vector.broadcast %37 : vector<4x8x1xf32> to vector<4x8x8xf32>
    %39 = arith.subf %35, %38 : vector<4x8x8xf32>
    %40 = math.exp %39 : vector<4x8x8xf32>
    %cst_24 = arith.constant dense<0.000000e+00> : vector<4x8xf32>
    %41 = vector.multi_reduction <add>, %40, %cst_24 [2] : vector<4x8x8xf32> to vector<4x8xf32>
    %42 = vector.shape_cast %41 : vector<4x8xf32> to vector<4x8x1xf32>
    %43 = tpu.reciprocal %42 {approx = true} : vector<4x8x1xf32> -> vector<4x8x1xf32>
    %44 = vector.broadcast %43 : vector<4x8x1xf32> to vector<4x8x8xf32>
    %45 = arith.mulf %40, %44 : vector<4x8x8xf32>
    %46 = arith.truncf %45 : vector<4x8x8xf32> to vector<4x8x8xbf16>
    %47 = arith.truncf %13 : vector<4x8x256xf32> to vector<4x8x256xbf16>
    %cst_25 = arith.constant dense<0.000000e+00> : vector<4x8x256xf32>
    %48 = tpu.matmul %46, %47, %cst_25 {dimension_numbers = #tpu.dot_dimension_numbers<[2], [1], [1], [2], [0, 0, 0, 1, 1, 2], [0], [0]>} : vector<4x8x8xbf16>, vector<4x8x256xbf16>, vector<4x8x256xf32> -> vector<4x8x256xf32>
    %49 = vector.shape_cast %48 : vector<4x8x256xf32> to vector<32x256xf32>
    %50 = arith.truncf %49 : vector<32x256xf32> to vector<32x256xbf16>
    %cst_26 = arith.constant dense<0.000000e+00> : vector<32x256xf32>
    %51 = tpu.matmul %7, %50, %cst_26 {dimension_numbers = #tpu.dot_dimension_numbers<[1], [0], [0], [1], [0, 0, 1, 1], [], []>} : vector<32x32xbf16>, vector<32x256xbf16>, vector<32x256xf32> -> vector<32x256xf32>
    %c0_27 = arith.constant 0 : index
    %c0_28 = arith.constant 0 : index
    %c0_29 = arith.constant 0 : index
    %52 = vector.load %arg8[%c0_27, %c0_28, %c0_29] : memref<1x32x256xf32, #tpu.memory_space<vmem>>, vector<1x32x256xf32>
    %53 = vector.shape_cast %52 : vector<1x32x256xf32> to vector<32x256xf32>
    %54 = vector.shape_cast %51 : vector<32x256xf32> to vector<1x32x256xf32>
    tpu.vector_store %arg8[%c0_27, %c0_28, %c0_29], %54 {strides = array<i32>} : memref<1x32x256xf32, #tpu.memory_space<vmem>>, vector<1x32x256xf32>,
    return
  }
  func.func @transform_0(%arg0: i32) -> (i32, i32, i32) {
    %c0_i32 = arith.constant 0 : i32
    %c0_i32_0 = arith.constant 0 : i32
    %c0_i32_1 = arith.constant 0 : i32
    %c0_i32_2 = arith.constant 0 : i32
    return %c0_i32, %c0_i32_0, %c0_i32_1 : i32, i32, i32
  }
  func.func @transform_1(%arg0: i32) -> (i32, i32, i32) {
    %c0_i32 = arith.constant 0 : i32
    %c0_i32_0 = arith.constant 0 : i32
    %c0_i32_1 = arith.constant 0 : i32
    return %arg0, %c0_i32, %c0_i32_0 : i32, i32, i32
  }
  func.func @transform_2(%arg0: i32) -> (i32, i32, i32) {
    %c0_i32 = arith.constant 0 : i32
    %c0_i32_0 = arith.constant 0 : i32
    %c0_i32_1 = arith.constant 0 : i32
    return %arg0, %c0_i32, %c0_i32_0 : i32, i32, i32
  }
  func.func @transform_3(%arg0: i32) -> (i32, i32) {
    %c0_i32 = arith.constant 0 : i32
    %c0_i32_0 = arith.constant 0 : i32
    %c0_i32_1 = arith.constant 0 : i32
    return %c0_i32, %c0_i32_0 : i32, i32
  }
  func.func @transform_4(%arg0: i32) -> (i32, i32) {
    %c0_i32 = arith.constant 0 : i32
    %c0_i32_0 = arith.constant 0 : i32
    %c0_i32_1 = arith.constant 0 : i32
    return %c0_i32, %c0_i32_0 : i32, i32
  }
  func.func @transform_5(%arg0: i32) -> (i32, i32) {
    %c0_i32 = arith.constant 0 : i32
    %c0_i32_0 = arith.constant 0 : i32
    %c0_i32_1 = arith.constant 0 : i32
    return %c0_i32, %c0_i32_0 : i32, i32
  }
  func.func @transform_6(%arg0: i32) -> (i32, i32) {
    %c0_i32 = arith.constant 0 : i32
    %c0_i32_0 = arith.constant 0 : i32
    %c0_i32_1 = arith.constant 0 : i32
    return %c0_i32, %c0_i32_0 : i32, i32
  }
  func.func @transform_7(%arg0: i32) -> (i32, i32, i32) {
    %c0_i32 = arith.constant 0 : i32
    %c0_i32_0 = arith.constant 0 : i32
    %c0_i32_1 = arith.constant 0 : i32
    return %arg0, %c0_i32, %c0_i32_0 : i32, i32, i32
  }
}

</mosaic_0001>

<bundles_post_ra>
// kernel: tpu_custom_call.1
= control target key start
LH: loop header
LB: loop body
LE: loop exit
PB: predicated region body
PF: predicated region fallthrough
CT: control target
= control target key end

     0   :  { %s2378_s0 = inlined_call_operand.vmem [shape: f32[4,1,1], index: 0, kind: input, shape index: {}]   ;;  %s2379_s1 = inlined_call_operand.hbm [shape: bf16[2,32,256], index: 1, kind: input, shape index: {}]   ;;  %s2380_s2 = inlined_call_operand.hbm [shape: bf16[2,32,256], index: 2, kind: input, shape index: {}]   ;;  %s2381_s3 = inlined_call_operand.vmem [shape: bf16[32,32], index: 3, kind: input, shape index: {}]   ;;  %s2382_s4 = inlined_call_operand.hbm [shape: bf16[32,32], index: 4, kind: input, shape index: {}]   ;;  %s2383_s5 = inlined_call_operand.hbm [shape: bf16[32,32], index: 5, kind: input, shape index: {}]   ;;  %s2384_s6 = inlined_call_operand.hbm [shape: bf16[32,32], index: 6, kind: input, shape index: {}]   ;;  %s2385_s7 = inlined_call_operand.hbm [shape: f32[2,32,256], index: 7, kind: output, shape index: {}]  }
   0x1   :  { %2390 = sst [smem:[#allocation18_spill]] %s2379_s1 }
   0x2   :  { %2391 = sst [smem:[#allocation19_spill]] %s2382_s4 }
   0x3   :  { %2392 = sst [smem:[#allocation20_spill]] %s2383_s5 }
   0x4   :  { %12 = vsyncpa [#allocation3], 0 }
   0x5   :  { %14 = vsyncpa [#allocation3 + $0x1], 0 }
   0x6   :  { %15 = vsyncpa [#allocation6], 0 }
   0x7   :  { %17 = vsyncpa [#allocation6 + $0x1], 0 }
   0x8   :  { %18 = vsyncpa [#allocation9], 0 }
   0x9   :  { %19 = vsyncpa [#allocation4], 0 }
   0xa   :  { %21 = vsyncpa [#allocation4 + $0x1], 0  ;;  %s1909_s24 = smov 0   ;;  %s1911_s25 = smov 0  }
   0xb   :  { %s1913_s26 = smov 0   ;;  %s1915_s27 = smov 0  }
   0xc LB: > { %s1930_s28 = sadd.s32 4294967295, %s1854_s27   ;;  %s1422_s29 = sadd.s32 4294967294, %s1854_s27   ;;  %s1854_s27 = sphi %s1915_s27, %s2417_s27   ;;  %s1850_s26 = sphi %s1913_s26, %s2416_s26   ;;  %s1846_s25 = sphi %s1911_s25, %s2415_s25   ;;  %s1842_s24 = sphi %s1909_s24, %s2414_s24  }
   0xd   : > { %p68_p0 = scmp.ne.s32.totalorder %s1846_s25, %s1842_s24  ;;  %p2386_p1 = scmp.eq.s32.totalorder %s1930_s28, 0 }
   0xe   : > { %p208_p3 = scmp.eq.s32.totalorder %s1422_s29, 1  ;;  %p1423_p5 = scmp.ge.s32.totalorder %s1854_s27, 1 }
   0xf   : > { %p1939_p4 = por %p2386_p1, %p68_p0  ;;  %p215_p7 = scmp.lt.s32.totalorder %s1854_s27, 3 }
  0x10   : > { %p1944_p6 = por %p208_p3, %p68_p0  ;;  %s1856_s10 = smov [#allocation7]  }
  0x11   : > { %s2393_s30 = scalar_select %p1939_p4, 1, 0 }
  0x12   : > { %s2394_s8 = scalar_select %p1944_p6, 1, 0 }
  0x13   : > { %p1949_p8 = pnand %p1423_p5, %p215_p7  ;;  %s233_s11 = sshll.u32 %s1856_s10, 4  ;;  %s1953_s11 = int_to_ptr.vmem [resolvable:$true] %s233_s11 }
  0x14   : > { %2395 = sst [smem:[#allocation17_spill]] %s2394_s8  ;;  %s1857_s13 = smov [#allocation8]  }
  0x15   : > { %s2396_s9 = scalar_select %p1949_p8, 1, 0 }
  0x16   : > { %p1507_p9 = pneg %p1949_p8  ;;  %s246_s14 = sshll.u32 %s1857_s13, 4  ;;  %s1964_s14 = int_to_ptr.vmem [resolvable:$true] %s246_s14 }
  0x17   : > { %s1858_s15 = smov [#allocation10]   ;;  %s2398_s4 = sld [smem:[#allocation19_spill]] }
  0x18   : > { %p1960_p11 = pnand %p1507_p9, %p2386_p1  ;;  %s1966_s16 = sshll.u32 %s1858_s15, 4  ;;  %s260_s16 = int_to_ptr.vmem [resolvable:$true] %s1966_s16 }
  0x1a   : > { %p1976_p13 = pneg %p1960_p11 }
  0x1d   : > { %s1632_s19 = scalar_lea.hbm %s2398_s4, 256 }
  0x1e   : > { %p1633_p12 = scmp.ne.s32.totalorder %s2398_s4, %s1632_s19  ;;  %p1639_p5 = scmp.lt.u32.totalorder %s1632_s19, %s2398_s4 }
  0x20   : > { %p1635_p0 = pnand %p1976_p13, %p1633_p12 }
  0x22   : > { %p1636_p3 = pneg %p1635_p0 }
  0x24   : > { %p1641_p7 = pnand %p1639_p5, %p1636_p3 }
  0x26   : > { %1644 = shalt.err (!%p1641_p7)
}
  0x27   : > { %s1645_s10 = scalar_lea.vmem %s1953_s11, 256  ;;  %p1653_p2 = scmp.lt.s32.totalorder %s1953_s11, %s1953_s11 }
  0x28   : > { %p1646_p9 = scmp.ne.s32.totalorder %s1953_s11, %s1645_s10  ;;  %p1654_p6 = scmp.lt.s32.totalorder %s1645_s10, %s1645_s10 }
  0x2a   : > { %p1648_p10 = pnand %p1646_p9, %p1976_p13  ;;  %p1655_p12 = por %p1654_p6, %p1653_p2 }
  0x2c   : > { %p1649_p1 = pneg %p1648_p10 }
  0x2e   : > { %p1656_p0 = pnand %p1655_p12, %p1649_p1 }
  0x30   : > { %1659 = shalt.err (!%p1656_p0)
}
  0x31   : > { %s1859_s13 = smov 64   ;;  %s1860_s15 = smov 4  }
  0x32   : > { %1510 = dma.hbm_to_vmem [thread:$0]  (!%p1960_p11), %s2398_s4, 256, %s1953_s11, [#allocation6], %s1859_s13, %s1859_s13, %s1860_s15  }
  0x33   : > { %s2400_s5 = sld [smem:[#allocation20_spill]] }
  0x39   : > { %s1660_s21 = scalar_lea.hbm %s2400_s5, 256 }
  0x3a   : > { %p1661_p1 = scmp.ne.s32.totalorder %s2400_s5, %s1660_s21  ;;  %p1667_p10 = scmp.lt.u32.totalorder %s1660_s21, %s2400_s5 }
  0x3c   : > { %p1663_p2 = pnand %p1661_p1, %p1976_p13 }
  0x3e   : > { %p1664_p6 = pneg %p1663_p2 }
  0x40   : > { %p1669_p3 = pnand %p1667_p10, %p1664_p6 }
  0x42   : > { %1672 = shalt.err (!%p1669_p3)
}
  0x43   : > { %s1673_s11 = scalar_lea.vmem %s1964_s14, 256  ;;  %p1681_p12 = scmp.lt.s32.totalorder %s1964_s14, %s1964_s14 }
  0x44   : > { %p1674_p5 = scmp.ne.s32.totalorder %s1964_s14, %s1673_s11  ;;  %p1682_p0 = scmp.lt.s32.totalorder %s1673_s11, %s1673_s11 }
  0x46   : > { %p1676_p7 = pnand %p1674_p5, %p1976_p13  ;;  %p1683_p1 = por %p1682_p0, %p1681_p12 }
  0x48   : > { %p1677_p9 = pneg %p1676_p7 }
  0x4a   : > { %p1684_p2 = pnand %p1683_p1, %p1677_p9 }
  0x4c   : > { %1687 = shalt.err (!%p1684_p2)
}
  0x4d   : > { %1513 = dma.hbm_to_vmem [thread:$0]  (!%p1960_p11), %s2400_s5, 256, %s1964_s14, [#allocation9], %s1859_s13, %s1859_s13, %s1860_s15  }
  0x4e   : > { %s1688_s20 = scalar_lea.hbm %s2384_s6, 256 }
  0x4f   : > { %p1689_p6 = scmp.ne.s32.totalorder %s2384_s6, %s1688_s20  ;;  %p1695_p5 = scmp.lt.u32.totalorder %s1688_s20, %s2384_s6 }
  0x51   : > { %p1691_p10 = pnand %p1689_p6, %p1976_p13 }
  0x53   : > { %p1692_p3 = pneg %p1691_p10 }
  0x55   : > { %p1697_p7 = pnand %p1695_p5, %p1692_p3 }
  0x57   : > { %1700 = shalt.err (!%p1697_p7)
}
  0x58   : > { %s1701_s11 = scalar_lea.vmem %s260_s16, 256  ;;  %p1709_p1 = scmp.lt.s32.totalorder %s260_s16, %s260_s16 }
  0x59   : > { %p1702_p9 = scmp.ne.s32.totalorder %s260_s16, %s1701_s11  ;;  %p1710_p2 = scmp.lt.s32.totalorder %s1701_s11, %s1701_s11 }
  0x5b   : > { %p1704_p12 = pnand %p1702_p9, %p1976_p13  ;;  %p1711_p4 = por %p1710_p2, %p1709_p1 }
  0x5d   : > { %p1705_p0 = pneg %p1704_p12 }
  0x5f   : > { %p1712_p8 = pnand %p1711_p4, %p1705_p0 }
  0x61   : > { %1715 = shalt.err (!%p1712_p8)
}
  0x62   : > { %1516 = dma.hbm_to_vmem [thread:$0]  (!%p1960_p11), %s2384_s6, 256, %s260_s16, [#allocation9], %s1859_s13, %s1859_s13, %s1860_s15  }
  0x63   : > { %s2049_s12 = sadd.s32 1, %s1854_s27   ;;  %s55_s17 = sadd.s32 1, %s1850_s26 }
  0x64   : > { %s52_s22 = ssub.s32 %s1854_s27, %s2049_s12  ;;  %p62_p8 = scmp.ne.s32.totalorder %s1850_s26, %s1846_s25 }
  0x65   : > { %p53_p4 = scmp.eq.s32.totalorder %s52_s22, 0  ;;  %p63_p13 = scmp.eq.s32.totalorder %s1854_s27, 0 }
  0x66   : > { %p1531_p6 = scmp.lt.s32.totalorder %s1854_s27, 2  ;;  %p2401_p3 = scmp.eq.s32.totalorder %s1930_s28, 1 }
  0x67   : > { %s2059_s18 = scalar_select %p53_p4, %s1850_s26, %s55_s17  }
  0x68   : > { %p64_p10 = por %p63_p13, %p62_p8  ;;  %p2063_p5 = por %p2401_p3, %p62_p8 }
  0x69   : > { %s273_s20 = sand.u32 1, %s1850_s26   ;;  %s1482_s21 = sshll.u32 %s1854_s27, 9 }
  0x6a   : > { %s2069_s16 = sshll.u32 %s273_s20, 5  ;;  %s2403_s1 = sld [smem:[#allocation18_spill]] }
  0x6b   : > { %s277_s29 = scalar_lea.vmem [#allocation2], %s2069_s16  ;;  %p2079_p11 = pnand %p1531_p6, %p64_p10 }
  0x6c   : > { %s284_s10 = sshll.u32 %s277_s29, 4  ;;  %s2085_s14 = scalar_lea.sflag [#allocation3], %s273_s20  ;;  %s2083_s10 = int_to_ptr.vmem [resolvable:$true] %s284_s10 }
  0x6d   : > { %p1718_p9 = pneg %p2079_p11 }
  0x70   : > { %s2076_s23 = scalar_lea.hbm %s2403_s1, %s1482_s21  ;;  %s1721_s13 = scalar_lea.hbm %s2403_s1, 1024 }
  0x71   : > { %s1716_s8 = scalar_lea.hbm %s2076_s23, 512  ;;  %p1722_p1 = scmp.lt.u32.totalorder %s2076_s23, %s2403_s1 }
  0x72   : > { %p1717_p7 = scmp.ne.s32.totalorder %s2076_s23, %s1716_s8  ;;  %p1723_p2 = scmp.lt.u32.totalorder %s1721_s13, %s1716_s8 }
  0x73   : > { %p1725_p8 = scmp.lt.u32.totalorder %s1716_s8, %s2076_s23 }
  0x74   : > { %p1719_p12 = pnand %p1718_p9, %p1717_p7  ;;  %p1724_p4 = por %p1723_p2, %p1722_p1 }
  0x76   : > { %p1720_p0 = pneg %p1719_p12  ;;  %p1726_p13 = por %p1725_p8, %p1724_p4 }
  0x78   : > { %p1727_p6 = pnand %p1726_p13, %p1720_p0 }
  0x7a   : > { %1730 = shalt.err (!%p1727_p6)
}
  0x7b   : > { %s1731_s20 = scalar_lea.vmem %s2083_s10, 512  ;;  %s1861_s22 = smov [#allocation2]  }
  0x7c   : > { %p1732_p10 = scmp.ne.s32.totalorder %s2083_s10, %s1731_s20  ;;  %s1736_s17 = sshll.u32 %s1861_s22, 4  ;;  %s1737_s17 = int_to_ptr.vmem [resolvable:$false] %s1736_s17 }
  0x7d   : > { %s1738_s15 = scalar_lea.vmem %s1737_s17, 1024  ;;  %p1739_p12 = scmp.lt.s32.totalorder %s2083_s10, %s1737_s17 }
  0x7e   : > { %p1734_p3 = pnand %p1732_p10, %p1718_p9  ;;  %p1740_p1 = scmp.lt.s32.totalorder %s1738_s15, %s1731_s20 }
  0x80   : > { %p1735_p7 = pneg %p1734_p3  ;;  %p1741_p2 = por %p1740_p1, %p1739_p12 }
  0x82   : > { %p1742_p4 = pnand %p1741_p2, %p1735_p7 }
  0x84   : > { %1745 = shalt.err (!%p1742_p4)
}
  0x85   : > { %s1862_s8 = smov 128   ;;  %s1863_s13 = smov 8  }
  0x86   : > { %1520 = dma.hbm_to_vmem [thread:$0]  (!%p2079_p11), %s2076_s23, 512, %s2083_s10, %s2085_s14, %s1862_s8, %s1862_s8, %s1863_s13  }
  0x87   : > { %s2121_s22 = scalar_lea.hbm %s2380_s2, %s1482_s21  ;;  %s298_s17 = scalar_lea.vmem [#allocation5], %s2069_s16 }
  0x88   : > { %s305_s15 = sshll.u32 %s298_s17, 4  ;;  %s294_s1 = sand.u32 1, %s1854_s27   ;;  %s2125_s15 = int_to_ptr.vmem [resolvable:$true] %s305_s15 }
  0x89   : > { %s2127_s4 = scalar_lea.sflag [#allocation6], %s294_s1  ;;  %s1746_s5 = scalar_lea.hbm %s2121_s22, 512 }
  0x8a   : > { %p1747_p0 = scmp.ne.s32.totalorder %s2121_s22, %s1746_s5  ;;  %s1751_s10 = scalar_lea.hbm %s2380_s2, 1024 }
  0x8b   : > { %p1752_p6 = scmp.lt.u32.totalorder %s2121_s22, %s2380_s2  ;;  %p1753_p10 = scmp.lt.u32.totalorder %s1751_s10, %s1746_s5 }
  0x8c   : > { %p1749_p8 = pnand %p1747_p0, %p1718_p9  ;;  %p1755_p7 = scmp.lt.u32.totalorder %s1746_s5, %s2121_s22 }
  0x8d   : > { %p1754_p3 = por %p1753_p10, %p1752_p6 }
  0x8e   : > { %p1750_p13 = pneg %p1749_p8 }
  0x8f   : > { %p1756_p12 = por %p1755_p7, %p1754_p3 }
  0x91   : > { %p1757_p1 = pnand %p1756_p12, %p1750_p13 }
  0x93   : > { %1760 = shalt.err (!%p1757_p1)
}
  0x94   : > { %s1761_s1 = scalar_lea.vmem %s2125_s15, 512  ;;  %s1864_s16 = smov [#allocation5]  }
  0x95   : > { %p1762_p2 = scmp.ne.s32.totalorder %s2125_s15, %s1761_s1  ;;  %s1766_s20 = sshll.u32 %s1864_s16, 4  ;;  %s1767_s20 = int_to_ptr.vmem [resolvable:$false] %s1766_s20 }
  0x96   : > { %s1768_s17 = scalar_lea.vmem %s1767_s20, 1024  ;;  %p1769_p8 = scmp.lt.s32.totalorder %s2125_s15, %s1767_s20 }
  0x97   : > { %p1764_p4 = pnand %p1762_p2, %p1718_p9  ;;  %p1770_p6 = scmp.lt.s32.totalorder %s1768_s17, %s1761_s1 }
  0x99   : > { %p1765_p0 = pneg %p1764_p4  ;;  %p1771_p10 = por %p1770_p6, %p1769_p8 }
  0x9b   : > { %p1772_p3 = pnand %p1771_p10, %p1765_p0 }
  0x9d   : > { %1775 = shalt.err (!%p1772_p3)
}
  0x9e   : > { %1523 = dma.hbm_to_vmem [thread:$0]  (!%p2079_p11), %s2121_s22, 512, %s2125_s15, %s2127_s4, %s1862_s8, %s1862_s8, %s1863_s13  }
  0x9f   : > { %p2405_p9 = scmp.ne.s32.totalorder %s2396_s9, 0 }
  0xa0   : > { %s2159_s5 = sand.u32 (!%p2405_p9), 1, %s1846_s25   ;;  %p2406_p13 = scmp.ne.s32.totalorder (!%p2405_p9), %s2393_s30, 0 }
  0xa1   : > { %317 = sbr.rel (%p2405_p9) target bundleno = 1585 (0x631), region = 48  ;;  %s1435_s23 = sshll.u32 (!%p2405_p9), %s2159_s5, 5 }
  0xa2   : > { %s320_s21 = scalar_lea.sflag (!%p2405_p9), [#allocation3], %s2159_s5  ;;  %s323_s10 = scalar_lea.vmem (!%p2405_p9), [#allocation2], %s1435_s23 }
  0xa8   : > { %1821 = dma.done.wait (%p2406_p13), %s320_s21, 512  }
  0xa9   : > { %1823 = vsyncadd (%p2406_p13), %s320_s21, 4294966784  ;;  %s328_s4 = sand.u32 1, %s1930_s28   ;;  %s2168_s9 = scalar_lea.vmem [#allocation5], %s1435_s23 }
  0xaa   : > { %s329_s11 = scalar_lea.sflag [#allocation6], %s328_s4 }
  0xab   : > { %1825 = dma.done.wait (%p2406_p13), %s329_s11, 512  }
  0xac   : > { %1827 = vsyncadd (%p2406_p13), %s329_s11, 4294966784  ;;  %p2407_p11 = scmp.eq.s32.totalorder %s1930_s28, 0 }
  0xae   : > { %1829 = dma.done.wait (%p2407_p11), [#allocation6], 256   ;;  %p2408_p7 = pmov %p2407_p11 }
  0xb0   : > { %1831 = vsyncadd (%p2408_p7), [#allocation6], 4294967040  ;;  %p2409_p12 = pmov %p2408_p7 }
  0xb1   : > { %p2410_p1 = pmov %p2408_p7 }
  0xb2   : > { %1833 = dma.done.wait (%p2409_p12), [#allocation9], 512  }
  0xb3   : > { %1835 = vsyncadd (%p2410_p1), [#allocation9], 4294966784  ;;  %v1865_v0 = vmov 0   ;;  %v1580_v1 = vld [vmem:[%s323_s10 + $0x4] ss:$8 sps:$4 sm:$0xff]   ;;  %v1586_v6 = vld [vmem:[%s2381_s3 + $0x8] sm:$0xff]  }
  0xb4   : > { %484 = vmatprep.mubr.bf16.mxu1 %v1865_v0  ;;  %474 = vmatprep.mubr.bf16.mxu0 %v1865_v0  ;;  %v1582_v2 = vld [vmem:[%s323_s10] ss:$8 sps:$4 sm:$0xff]   ;;  %v1583_v3 = vld [vmem:[%s323_s10 + $0x14] ss:$8 sps:$4 sm:$0xff]   ;;  %v1585_v4 = vld [vmem:[%s323_s10 + $0x10] ss:$8 sps:$4 sm:$0xff]  }
  0xb5   : > { %1578 = vset.pattern.permute.xlu0 %v1865_v0  ;;  %1579 = vset.pattern.permute.xlu1 %v1865_v0  ;;  %v1589_v5 = vld [vmem:[%s2168_s9 + $0x4] ss:$8 sps:$4 sm:$0xff]   ;;  %vm435_vm0 = vcmask 261120   ;;  %v1587_v7 = vld [vmem:[%s2168_s9] ss:$8 sps:$4 sm:$0xff]   ;;  %v1594_v9 = vld [vmem:[%s2381_s3] sm:$0xff]  }
  0xb6   : > { %1485 = vmatprep.subr.bf16.mxu1 %v1580_v1  ;;  %442 = vmatprep.subr.bf16.mxu0 %v1580_v1  ;;  %v1592_v8 = vld [vmem:[%s2168_s9 + $0x14] ss:$8 sps:$4 sm:$0xff]   ;;  %v1590_v10 = vld [vmem:[%s2168_s9 + $0x10] ss:$8 sps:$4 sm:$0xff]   ;;  %v1593_v11 = vld [vmem:[#allocation7] sm:$0xff]   ;;  %vm1005_vm1 = vcmask 1043456  }
  0xb7   : > { %1487 = vmatpush1.bf16.msra.mxu1 %v1582_v2  ;;  %443 = vmatpush1.bf16.msra.mxu0 %v1582_v2  ;;  %v1595_v12 = vld [vmem:[#allocation7 + $0x8] sm:$0xff]   ;;  %v1596_v53 = vld [vmem:[#allocation8] sm:$0xff]   ;;  %v1597_v54 = vld [vmem:[#allocation8 + $0x8] sm:$0xff]   ;;  %vm945_vm2 = vcmask 64512   ;;  %s1440_s21 = sshll.u32 %s2159_s5, 6  ;;  %s1484_s11 = sshll.u32 %s1930_s28, 10 }
  0xb8   : > { %1486 = vmatprep.subr.bf16.mxu1 %v1583_v3  ;;  %444 = vmatprep.subr.bf16.mxu0 %v1583_v3  ;;  %v1461_v55 = vld [vmem:[%s2378_s0] ss:$0 sm:$0xff]  ;;  %v1462_v56 = vld [vmem:[%s2378_s0 + $0x1] ss:$0 sm:$0xff]  ;;  %v1463_v57 = vld [vmem:[%s2378_s0 + $0x2] ss:$0 sm:$0xff]  ;;  %s2334_s8 = scalar_lea.hbm %s2385_s7, %s1484_s11 }
  0xb9   : > { %v1464_v58 = vld [vmem:[%s2378_s0 + $0x3] ss:$0 sm:$0xff]  ;;  %s379_s10 = scalar_lea.vmem [#allocation11], %s1440_s21  ;;  %s1285_s13 = scalar_lea.sflag [#allocation4], %s2159_s5 }
  0xba   : > { %s1298_s4 = sshll.u32 %s379_s10, 4  ;;  %s1866_s22 = smov [#allocation11]   ;;  %s2329_s4 = int_to_ptr.vmem [resolvable:$true] %s1298_s4 }
  0xbb   : > { %1488 = vmatpush1.bf16.msra.mxu1 %v1585_v4  ;;  %445 = vmatpush1.bf16.msra.mxu0 %v1585_v4  ;;  %s1776_s28 = scalar_lea.vmem %s2329_s4, 1024  ;;  %s1780_s15 = sshll.u32 %s1866_s22, 4  ;;  %s1781_s15 = int_to_ptr.vmem [resolvable:$false] %s1780_s15 }
  0xbc   : > { %531 = vmatprep.subr.bf16.mxu1 %v1589_v5  ;;  %600 = vmatprep.subr.bf16.mxu0 %v1589_v5  ;;  %p1777_p2 = scmp.ne.s32.totalorder %s2329_s4, %s1776_s28  ;;  %s1782_s14 = scalar_lea.vmem %s1781_s15, 2048 }
  0xbd   : > { %p1783_p8 = scmp.lt.s32.totalorder %s2329_s4, %s1781_s15  ;;  %p1784_p6 = scmp.lt.s32.totalorder %s1782_s14, %s1776_s28 }
  0xbe   : > { %1448 = vmatmul.mubr.msk.bf16.vlgmr.msra.gmra.mrb[0].mxu1 %vm435_vm0, %v1586_v6  ;;  %1447 = vmatmul.mubr.msk.bf16.vlgmr.msra.gmra.mrb[0].mxu0 %vm435_vm0, %v1594_v9  ;;  %p1778_p4 = pnand %p1777_p2, %p2063_p5 }
  0xbf   : > { %532 = vmatpush1.bf16.msra.mxu1 %v1587_v7  ;;  %563 = vmatprep.mubr.bf16.mxu1 %v1865_v0  ;;  %p1785_p10 = por %p1784_p6, %p1783_p8 }
  0xc0   : > { %533 = vmatprep.subr.bf16.mxu1 %v1592_v8  ;;  %601 = vmatpush1.bf16.msra.mxu0 %v1587_v7  ;;  %p1779_p0 = pneg %p1778_p4 }
  0xc1   : > { %602 = vmatprep.subr.bf16.mxu0 %v1592_v8  ;;  %632 = vmatprep.mubr.bf16.mxu0 %v1865_v0 }
  0xc2   : > { %p1786_p3 = pnand %p1785_p10, %p1779_p0 }
  0xc3   : > { %534 = vmatpush1.bf16.msra.mxu1 %v1590_v10 }
  0xc4   : > { %603 = vmatpush1.bf16.msra.mxu0 %v1590_v10 }
  0xc6   : > { %1455 = vmatmul.mubr.msk.bf16.vlgmr.msra.gmra.mrb[4].mxu1 %vm435_vm0, %v1593_v11 }
  0xc7   : > { %573 = vmatprep.mubr.bf16.mxu1 %v1865_v0  ;;  %1459 = vmatmul.mubr.msk.bf16.vlgmr.msra.gmra.mrb[4].mxu0 %vm435_vm0, %v1596_v53 }
  0xc8   : > { %642 = vmatprep.mubr.bf16.mxu0 %v1865_v0 }
  0xce   : > { %1456 = vmatmul.mubr.msk.bf16.gmra.mrb[8].mxu1 %vm435_vm0, %v1595_v12 }
  0xcf   : > { %1460 = vmatmul.mubr.msk.bf16.gmra.mrb[8].mxu0 %vm435_vm0, %v1597_v54 }
 0x191   : > { %v2203_v13 = vpop.f32.mrb[0].mxu1  ;;  %v2205_v14 = vpop.f32.mrb[0].mxu0 }
 0x192   : > { %v657_v15 = vmul.f32 %v2203_v13, %v2203_v13  ;;  %v2209_v16 = vpop.f32.mrb[1].mxu1  ;;  %v653_v17 = vmul.f32 %v2205_v14, %v2205_v14  ;;  %v2213_v18 = vpop.f32.mrb[1].mxu0 }
 0x193   : > { %v658_v19 = vmul.f32 %v2209_v16, %v2209_v16  ;;  %v2217_v20 = vpop.f32.mrb[2].mxu1  ;;  %v654_v21 = vmul.f32 %v2213_v18, %v2213_v18  ;;  %v2221_v22 = vpop.f32.mrb[2].mxu0 }
 0x194   : > { %v659_v23 = vmul.f32 %v2217_v20, %v2217_v20  ;;  %v2225_v24 = vpop.f32.mrb[3].mxu1  ;;  %v655_v25 = vmul.f32 %v2221_v22, %v2221_v22  ;;  %v2229_v26 = vpop.f32.mrb[3].mxu0 }
 0x195   : > { %v660_v27 = vmul.f32 %v2225_v24, %v2225_v24  ;;  %v656_v28 = vmul.f32 %v2229_v26, %v2229_v26  ;;  %v661_v29 = vadd.f32 %v654_v21, %v653_v17  ;;  %v667_v30 = vadd.f32 %v658_v19, %v657_v15 }
 0x197   : > { %v664_v31 = vadd.f32 %v656_v28, %v655_v25  ;;  %v670_v32 = vadd.f32 %v660_v27, %v659_v23 }
 0x199   : > { %v2235_v33 = vpop.f32.mrb[4].mxu1 }
 0x19a   : > { %v689_v34 = vmul.f32 %v2235_v33, %v2235_v33  ;;  %v567_v35 = vpop.f32.mrb[5].mxu1 }
 0x19b   : > { %v690_v36 = vmul.f32 %v567_v35, %v567_v35  ;;  %v2239_v37 = vpop.f32.mrb[6].mxu1 }
 0x19c   : > { %v691_v38 = vmul.f32 %v2239_v37, %v2239_v37  ;;  %v2243_v39 = vpop.f32.mrb[7].mxu1 }
 0x19d   : > { %v692_v40 = vmul.f32 %v2243_v39, %v2243_v39  ;;  %v697_v41 = vadd.f32 %v690_v36, %v689_v34 }
 0x19f   : > { %698 = vadd.xlane.f32.xlu0 %v697_v41  ;;  %v700_v42 = vadd.f32 %v692_v40, %v691_v38 }
 0x1a1   : > { %701 = vadd.xlane.f32.xlu1 %v700_v42  ;;  %v2247_v43 = vpop.f32.mrb[8].mxu1 }
 0x1a2   : > { %v693_v44 = vmul.f32 %v2247_v43, %v2247_v43  ;;  %v2251_v45 = vpop.f32.mrb[9].mxu1 }
 0x1a3   : > { %v694_v46 = vmul.f32 %v2251_v45, %v2251_v45  ;;  %v2255_v47 = vpop.f32.mrb[10].mxu1  ;;  %662 = vadd.xlane.f32.xlu0 %v661_v29 }
 0x1a4   : > { %v695_v48 = vmul.f32 %v2255_v47, %v2255_v47  ;;  %v2259_v49 = vpop.f32.mrb[11].mxu1 }
 0x1a5   : > { %v696_v50 = vmul.f32 %v2259_v49, %v2259_v49  ;;  %665 = vadd.xlane.f32.xlu1 %v664_v31  ;;  %v703_v51 = vadd.f32 %v694_v46, %v693_v44 }
 0x1a7   : > { %704 = vadd.xlane.f32.xlu0 %v703_v51  ;;  %v706_v52 = vadd.f32 %v696_v50, %v695_v48 }
 0x1a9   : > { %707 = vadd.xlane.f32.xlu1 %v706_v52 }
 0x1ab   : > { %668 = vadd.xlane.f32.xlu0 %v667_v30 }
 0x1ad   : > { %671 = vadd.xlane.f32.xlu1 %v670_v32 }
 0x1be   : > { %930 = vperm.xlu1 %1579, %v1462_v56  }
 0x1c1   : > { %926 = vperm.xlu0 %1578, %v1461_v55  }
 0x1c2   : > { %934 = vperm.xlu1 %1579, %v1463_v57  }
 0x1c6   : > { %938 = vperm.xlu1 %1579, %v1464_v58  }
 0x22c   : > { %v699_v59 = vpop.xlane.xlu0 %698 }
 0x22d   : > { %v709_v60 = vmax.f32 %v699_v59, 1e-24 }
 0x22e   : > { %v702_v61 = vpop.xlane.xlu1 %701 }
 0x22f   : > { %1600 = vrsqrt.f32 %v709_v60  ;;  %v710_v62 = vmax.f32 %v702_v61, 1e-24 }
 0x230   : > { %v663_v63 = vpop.xlane.xlu0 %662 }
 0x231   : > { %1602 = vrsqrt.f32 %v710_v62  ;;  %v673_v1 = vmax.f32 %v663_v63, 1e-24 }
 0x232   : > { %v666_v2 = vpop.xlane.xlu1 %665 }
 0x233   : > { %1604 = vrsqrt.f32 %v673_v1  ;;  %v674_v3 = vmax.f32 %v666_v2, 1e-24 }
 0x234   : > { %v705_v4 = vpop.xlane.xlu0 %704 }
 0x235   : > { %1606 = vrsqrt.f32 %v674_v3  ;;  %v711_v5 = vmax.f32 %v705_v4, 1e-24 }
 0x236   : > { %v708_v6 = vpop.xlane.xlu1 %707 }
 0x237   : > { %1608 = vrsqrt.f32 %v711_v5  ;;  %v712_v7 = vmax.f32 %v708_v6, 1e-24 }
 0x238   : > { %v669_v8 = vpop.xlane.xlu0 %668 }
 0x239   : > { %v1601_v9 = vpop.eup %1600  ;;  %1610 = vrsqrt.f32 %v712_v7  ;;  %v675_v10 = vmax.f32 %v669_v8, 1e-24 }
 0x23a   : > { %v672_v11 = vpop.xlane.xlu1 %671  ;;  %v718_v12 = vmul.f32 %v1601_v9, %v567_v35  ;;  %v717_v15 = vmul.f32 %v1601_v9, %v2235_v33 }
 0x23b   : > { %v1603_v17 = vpop.eup %1602  ;;  %1612 = vrsqrt.f32 %v675_v10  ;;  %v676_v19 = vmax.f32 %v672_v11, 1e-24 }
 0x23c   : > { %v734_v21 = vpack.c.bf16 %v718_v12, %v718_v12  ;;  %v733_v23 = vpack.c.bf16 %v717_v15, %v717_v15  ;;  %v720_v25 = vmul.f32 %v1603_v17, %v2243_v39  ;;  %v719_v34 = vmul.f32 %v1603_v17, %v2239_v37 }
 0x23d   : > { %v1605_v27 = vpop.eup %1604  ;;  %1614 = vrsqrt.f32 %v676_v19 }
 0x23e   : > { %741 = vmatprep.subr.bf16.mxu1 %v734_v21  ;;  %v736_v28 = vpack.c.bf16 %v720_v25, %v720_v25  ;;  %v682_v29 = vmul.f32 %v1605_v27, %v2213_v18  ;;  %v681_v31 = vmul.f32 %v1605_v27, %v2205_v14  ;;  %v735_v14 = vpack.c.bf16 %v719_v34, %v719_v34  ;;  %v931_v17 = vpop.permute.xlu1 %930 }
 0x23f   : > { %v1607_v30 = vpop.eup %1606  ;;  %742 = vmatpush1.bf16.xpose.msra.mxu1 %v733_v23 }
 0x240   : > { %781 = vmatprep.subr.bf16.mxu1 %v736_v28  ;;  %v726_v32 = vpack.c.bf16 %v682_v29, %v682_v29  ;;  %v684_v35 = vmul.f32 %v1607_v30, %v2229_v26  ;;  %v725_v40 = vpack.c.bf16 %v681_v31, %v681_v31  ;;  %v927_v9 = vpop.permute.xlu0 %926 }
 0x241   : > { %v1609_v33 = vpop.eup %1608 }
 0x242   : > { %773 = vmatprep.mubr.bf16.mxu1 %v726_v32  ;;  %v722_v36 = vmul.f32 %v1609_v33, %v2251_v45  ;;  %v721_v38 = vmul.f32 %v1609_v33, %v2247_v43  ;;  %v728_v46 = vpack.c.bf16 %v684_v35, %v684_v35  ;;  %v683_v45 = vmul.f32 %v1607_v30, %v2221_v22  ;;  %v935_v25 = vpop.permute.xlu1 %934 }
 0x243   : > { %v1611_v39 = vpop.eup %1610 }
 0x244   : > { %v738_v41 = vpack.c.bf16 %v722_v36, %v722_v36  ;;  %v737_v18 = vpack.c.bf16 %v721_v38, %v721_v38  ;;  %v724_v42 = vmul.f32 %v1611_v39, %v2259_v49  ;;  %v723_v49 = vmul.f32 %v1611_v39, %v2255_v47 }
 0x245   : > { %v1613_v44 = vpop.eup %1612  ;;  %v727_v52 = vpack.c.bf16 %v683_v45, %v683_v45 }
 0x246   : > { %774 = vmatmul.mubr.bf16.vlgmr.msra.gmra.mrb[12].mxu1 %v725_v40  ;;  %821 = vmatprep.subr.bf16.mxu0 %v738_v41  ;;  %v740_v48 = vpack.c.bf16 %v724_v42, %v724_v42  ;;  %v686_v37 = vmul.f32 %v1613_v44, %v2209_v16  ;;  %v685_v50 = vmul.f32 %v1613_v44, %v2203_v13  ;;  %v634_v13 = vpop.f32.mrb[4].mxu0  ;;  %v939_v40 = vpop.permute.xlu1 %938 }
 0x247   : > { %v1615_v26 = vpop.eup %1614  ;;  %782 = vmatpush1.bf16.xpose.msra.mxu1 %v735_v14  ;;  %813 = vmatprep.mubr.bf16.mxu1 %v728_v46  ;;  %v739_v54 = vpack.c.bf16 %v723_v49, %v723_v49  ;;  %v636_v47 = vpop.f32.mrb[5].mxu0  ;;  %v994_v57 = vpack.c.bf16 %v634_v13, %v634_v13 }
 0x248   : > { %822 = vmatpush1.bf16.xpose.msra.mxu0 %v737_v18  ;;  %861 = vmatprep.subr.bf16.mxu1 %v740_v48  ;;  %v730_v43 = vpack.c.bf16 %v686_v37, %v686_v37  ;;  %v688_v51 = vmul.f32 %v1615_v26, %v2225_v24  ;;  %v729_v53 = vpack.c.bf16 %v685_v50, %v685_v50  ;;  %v638_v56 = vpop.f32.mrb[6].mxu0 }
 0x249   : > { %v687_v55 = vmul.f32 %v1615_v26, %v2217_v20  ;;  %v640_v24 = vpop.f32.mrb[7].mxu0  ;;  %v995_v58 = vpack.c.bf16 %v636_v47, %v636_v47  ;;  %v996_v59 = vpack.c.bf16 %v638_v56, %v638_v56  ;;  %v1007_v61 = vsel %vm1005_vm1, %v994_v57, 0 }
 0x24a   : > { %853 = vmatprep.mubr.bf16.mxu0 %v730_v43  ;;  %v732_v16 = vpack.c.bf16 %v688_v51, %v688_v51  ;;  %v997_v60 = vpack.c.bf16 %v640_v24, %v640_v24  ;;  %v644_v20 = vpop.f32.mrb[8].mxu0 }
 0x24b   : > { %v731_v22 = vpack.c.bf16 %v687_v55, %v687_v55  ;;  %v1057_v62 = vsel %vm1005_vm1, %v996_v59, 0  ;;  %1465 = vmatprep.subr.msk.bf16.mxu0 %vm1005_vm1, %v995_v58  ;;  %v646_v63 = vpop.f32.mrb[9].mxu0  ;;  %v998_v1 = vpack.c.bf16 %v644_v20, %v644_v20 }
 0x24c   : > { %v999_v2 = vpack.c.bf16 %v646_v63, %v646_v63  ;;  %v648_v3 = vpop.f32.mrb[10].mxu0 }
 0x24d   : > { %v1000_v4 = vpack.c.bf16 %v648_v3, %v648_v3  ;;  %v650_v5 = vpop.f32.mrb[11].mxu0  ;;  %v2300_v6 = vsel %vm1005_vm1, %v998_v1, 0 }
 0x24e   : > { %814 = vmatmul.mubr.bf16.vlgmr.msra.gmra.mrb[16].mxu1 %v727_v52  ;;  %v1001_v7 = vpack.c.bf16 %v650_v5, %v650_v5 }
 0x24f   : > { %854 = vmatmul.mubr.bf16.vlgmr.msra.gmra.mrb[12].mxu0 %v729_v53  ;;  %862 = vmatpush1.bf16.xpose.msra.mxu1 %v739_v54  ;;  %v2304_v8 = vsel %vm1005_vm1, %v1000_v4, 0 }
 0x250   : > { %893 = vmatprep.mubr.bf16.mxu1 %v732_v16  ;;  %1044 = vmatprep.mubr.bf16.mxu0 %v1865_v0 }
 0x251   : > { %1467 = vmatprep.subr.msk.bf16.mxu1 %vm1005_vm1, %v997_v60  ;;  %1013 = vmatpush1.bf16.msra.mxu0 %v1007_v61 }
 0x252   : > { %1469 = vmatprep.subr.msk.bf16.mxu0 %vm1005_vm1, %v999_v2 }
 0x256   : > { %894 = vmatmul.mubr.bf16.vlgmr.msra.gmra.mrb[20].mxu1 %v731_v22 }
 0x257   : > { %1094 = vmatprep.mubr.bf16.mxu1 %v1865_v0  ;;  %1063 = vmatpush1.bf16.msra.mxu1 %v1057_v62 }
 0x258   : > { %1471 = vmatprep.subr.msk.bf16.mxu1 %vm1005_vm1, %v1001_v7 }
 0x319   : > { %v775_v10 = vpop.f32.mrb[12].mxu1 }
 0x31a   : > { %v941_v11 = vmul.f32 %v927_v9, %v775_v10  ;;  %v777_v12 = vpop.f32.mrb[13].mxu1 }
 0x31b   : > { %v778_v15 = vpop.f32.mrb[14].mxu1 }
 0x31c   : > { %v779_v19 = vpop.f32.mrb[15].mxu1  ;;  %v946_v21 = vsel %vm945_vm2, %v941_v11, -inf }
 0x31d   : > { %947 = vmax.xlane.f32.xlu1 %v946_v21 }
 0x321   : > { %v815_v23 = vpop.f32.mrb[16].mxu1 }
 0x322   : > { %v942_v27 = vmul.f32 %v931_v17, %v815_v23  ;;  %v855_v28 = vpop.f32.mrb[12].mxu0  ;;  %v817_v29 = vpop.f32.mrb[17].mxu1 }
 0x323   : > { %v943_v30 = vmul.f32 %v935_v25, %v855_v28  ;;  %v857_v31 = vpop.f32.mrb[13].mxu0  ;;  %v818_v32 = vpop.f32.mrb[18].mxu1 }
 0x324   : > { %v858_v33 = vpop.f32.mrb[14].mxu0  ;;  %v819_v34 = vpop.f32.mrb[19].mxu1  ;;  %v949_v35 = vsel %vm945_vm2, %v942_v27, -inf }
 0x325   : > { %v859_v36 = vpop.f32.mrb[15].mxu0  ;;  %950 = vmax.xlane.f32.xlu0 %v949_v35  ;;  %v952_v38 = vsel %vm945_vm2, %v943_v30, -inf }
 0x326   : > { %953 = vmax.xlane.f32.xlu1 %v952_v38 }
 0x329   : > { %v895_v39 = vpop.f32.mrb[20].mxu1 }
 0x32a   : > { %v944_v41 = vmul.f32 %v939_v40, %v895_v39  ;;  %v897_v18 = vpop.f32.mrb[21].mxu1  ;;  %v1598_v39 = vld [vmem:[#allocation10] sm:$0xff]   ;;  %v1599_v40 = vld [vmem:[#allocation10 + $0x8] sm:$0xff]  }
 0x32b   : > { %v898_v42 = vpop.f32.mrb[22].mxu1 }
 0x32c   : > { %v899_v44 = vpop.f32.mrb[23].mxu1  ;;  %v955_v14 = vsel %vm945_vm2, %v944_v41, -inf }
 0x32d   : > { %956 = vmax.xlane.f32.xlu1 %v955_v14 }
 0x3aa   : > { %v948_v46 = vpop.xlane.xlu1 %947 }
 0x3ab   : > { %v958_v48 = vsub.f32 %v941_v11, %v948_v46 }
 0x3ad   : > { %v962_v37 = vmul.f32 1.442695, %v958_v48 }
 0x3af   : > { %1616 = vpow2.f32 %v962_v37 }
 0x3b2   : > { %v951_v26 = vpop.xlane.xlu0 %950 }
 0x3b3   : > { %v959_v43 = vsub.f32 %v942_v27, %v951_v26  ;;  %v954_v45 = vpop.xlane.xlu1 %953 }
 0x3b4   : > { %v960_v50 = vsub.f32 %v943_v30, %v954_v45 }
 0x3b5   : > { %v964_v49 = vmul.f32 1.442695, %v959_v43 }
 0x3b6   : > { %v966_v51 = vmul.f32 1.442695, %v960_v50 }
 0x3b7   : > { %1618 = vpow2.f32 %v964_v49 }
 0x3b8   : > { %1620 = vpow2.f32 %v966_v51 }
 0x3b9   : > { %v1617_v52 = vpop.eup %1616 }
 0x3ba   : > { %v957_v53 = vpop.xlane.xlu1 %956  ;;  %v970_v54 = vsel %vm945_vm2, %v1617_v52, 0.0 }
 0x3bb   : > { %v961_v16 = vsub.f32 %v944_v41, %v957_v53  ;;  %971 = vadd.xlane.f32.xlu1 %v970_v54 }
 0x3bd   : > { %v968_v55 = vmul.f32 1.442695, %v961_v16 }
 0x3bf   : > { %1622 = vpow2.f32 %v968_v55 }
 0x3c1   : > { %v1619_v22 = vpop.eup %1618 }
 0x3c2   : > { %v1621_v13 = vpop.eup %1620  ;;  %v973_v47 = vsel %vm945_vm2, %v1619_v22, 0.0 }
 0x3c3   : > { %974 = vadd.xlane.f32.xlu1 %v973_v47  ;;  %v976_v56 = vsel %vm945_vm2, %v1621_v13, 0.0 }
 0x3c4   : > { %977 = vadd.xlane.f32.xlu0 %v976_v56 }
 0x3c9   : > { %v1623_v24 = vpop.eup %1622 }
 0x3ca   : > { %v979_v57 = vsel %vm945_vm2, %v1623_v24, 0.0 }
 0x3cb   : > { %980 = vadd.xlane.f32.xlu1 %v979_v57 }
 0x448   : > { %v972_v58 = vpop.xlane.xlu1 %971 }
 0x449   : > { %1624 = vrcp.f32 %v972_v58 }
 0x450   : > { %v975_v59 = vpop.xlane.xlu1 %974 }
 0x451   : > { %v978_v60 = vpop.xlane.xlu0 %977  ;;  %1626 = vrcp.f32 %v975_v59 }
 0x452   : > { %1628 = vrcp.f32 %v978_v60 }
 0x453   : > { %v1625_v61 = vpop.eup %1624 }
 0x454   : > { %v986_v62 = vmul.f32 %v1625_v61, %v1617_v52 }
 0x456   : > { %v990_v20 = vpack.c.bf16 %v986_v62, %v986_v62 }
 0x458   : > { %1466 = vmatmul.mubr.msk.bf16.vlgmr.msra.gmra.mrb[16].mxu0 %vm945_vm2, %v990_v20  ;;  %v981_v63 = vpop.xlane.xlu1 %980 }
 0x459   : > { %1113 = vmatpush1.bf16.msra.mxu0 %v2300_v6  ;;  %1630 = vrcp.f32 %v981_v63  ;;  %1144 = vmatprep.mubr.bf16.mxu0 %v1865_v0 }
 0x45b   : > { %v1627_v1 = vpop.eup %1626 }
 0x45c   : > { %v1629_v2 = vpop.eup %1628  ;;  %v987_v3 = vmul.f32 %v1627_v1, %v1619_v22 }
 0x45d   : > { %v988_v4 = vmul.f32 %v1629_v2, %v1621_v13 }
 0x45e   : > { %v991_v5 = vpack.c.bf16 %v987_v3, %v987_v3 }
 0x45f   : > { %v992_v7 = vpack.c.bf16 %v988_v4, %v988_v4 }
 0x460   : > { %1468 = vmatmul.mubr.msk.bf16.vlgmr.msra.gmra.mrb[24].mxu1 %vm945_vm2, %v991_v5 }
 0x461   : > { %1470 = vmatmul.mubr.msk.bf16.vlgmr.msra.gmra.mrb[20].mxu0 %vm945_vm2, %v992_v7  ;;  %1163 = vmatpush1.bf16.msra.mxu1 %v2304_v8 }
 0x462   : > { %1194 = vmatprep.mubr.bf16.mxu1 %v1865_v0  ;;  %1255 = vmatprep.mubr.bf16.mxu0 %v1865_v0 }
 0x463   : > { %v1631_v6 = vpop.eup %1630 }
 0x464   : > { %v989_v9 = vmul.f32 %v1631_v6, %v1623_v24 }
 0x466   : > { %v993_v10 = vpack.c.bf16 %v989_v9, %v989_v9 }
 0x468   : > { %1472 = vmatmul.mubr.msk.bf16.vlgmr.msra.gmra.mrb[28].mxu1 %vm945_vm2, %v993_v10 }
 0x52b   : > { %v1046_v11 = vpop.f32.mrb[16].mxu0 }
 0x52c   : > { %v1048_v12 = vpop.f32.mrb[17].mxu0 }
 0x52d   : > { %v1050_v15 = vpop.f32.mrb[18].mxu0 }
 0x52e   : > { %v1051_v17 = vpop.f32.mrb[19].mxu0 }
 0x533   : > { %v1096_v19 = vpop.f32.mrb[24].mxu1 }
 0x534   : > { %v1203_v21 = vpack.c.bf16 %v1096_v19, %v1046_v11  ;;  %v1146_v23 = vpop.f32.mrb[20].mxu0  ;;  %v1098_v25 = vpop.f32.mrb[25].mxu1 }
 0x535   : > { %v1204_v27 = vpack.c.bf16 %v1098_v25, %v1048_v12  ;;  %v1148_v28 = vpop.f32.mrb[21].mxu0  ;;  %v1100_v8 = vpop.f32.mrb[26].mxu1 }
 0x536   : > { %v1150_v29 = vpop.f32.mrb[22].mxu0  ;;  %v1101_v30 = vpop.f32.mrb[27].mxu1 }
 0x537   : > { %v1151_v31 = vpop.f32.mrb[23].mxu0  ;;  %1223 = vmatprep.subr.bf16.mxu0 %v1204_v27 }
 0x538   : > { %1224 = vmatpush1.bf16.msra.mxu0 %v1203_v21 }
 0x53b   : > { %v1196_v32 = vpop.f32.mrb[28].mxu1 }
 0x53c   : > { %v1205_v33 = vpack.c.bf16 %v1196_v32, %v1146_v23  ;;  %v1198_v34 = vpop.f32.mrb[29].mxu1 }
 0x53d   : > { %v1206_v35 = vpack.c.bf16 %v1198_v34, %v1148_v28  ;;  %v1200_v36 = vpop.f32.mrb[30].mxu1 }
 0x53e   : > { %v1201_v38 = vpop.f32.mrb[31].mxu1 }
 0x53f   : > { %1225 = vmatprep.subr.bf16.mxu0 %v1206_v35 }
 0x540   : > { %1226 = vmatpush1.bf16.msra.mxu0 %v1205_v33 }
 0x543   : > { %1475 = vmatmul.mubr.msk.bf16.vlgmr.msra.gmra.mrb[24].mxu0 %vm435_vm0, %v1598_v39 }
 0x544   : > { %1265 = vmatprep.mubr.bf16.mxu0 %v1865_v0 }
 0x54b   : > { %1476 = vmatmul.mubr.msk.bf16.gmra.mrb[28].mxu0 %vm435_vm0, %v1599_v40 }
 0x616   : > { %v1257_v41 = vpop.f32.mrb[24].mxu0 }
 0x617   : > { %1276 = vst [vmem:[%s379_s10] sm:$0xff] %v1257_v41  ;;  %v1259_v18 = vpop.f32.mrb[25].mxu0 }
 0x618   : > { %1277 = vst [vmem:[%s379_s10 + $0x8] sm:$0xff] %v1259_v18  ;;  %v1261_v42 = vpop.f32.mrb[26].mxu0 }
 0x619   : > { %1278 = vst [vmem:[%s379_s10 + $0x10] sm:$0xff] %v1261_v42  ;;  %v1263_v44 = vpop.f32.mrb[27].mxu0 }
 0x61a   : > { %1279 = vst [vmem:[%s379_s10 + $0x18] sm:$0xff] %v1263_v44 }
 0x61e   : > { %v1267_v0 = vpop.f32.mrb[28].mxu0 }
 0x61f   : > { %1280 = vst [vmem:[%s379_s10 + $0x20] sm:$0xff] %v1267_v0  ;;  %v1269_v14 = vpop.f32.mrb[29].mxu0 }
 0x620   : > { %1281 = vst [vmem:[%s379_s10 + $0x28] sm:$0xff] %v1269_v14  ;;  %v1271_v46 = vpop.f32.mrb[30].mxu0 }
 0x621   : > { %1282 = vst [vmem:[%s379_s10 + $0x30] sm:$0xff] %v1271_v46  ;;  %v1273_v48 = vpop.f32.mrb[31].mxu0 }
 0x622   : > { %1283 = vst [vmem:[%s379_s10 + $0x38] sm:$0xff] %v1273_v48 }
 0x623   : > { %1789 = shalt.err (!%p1786_p3)
}
 0x624   : > { %s1790_s29 = scalar_lea.hbm %s2334_s8, 1024  ;;  %s1794_s20 = scalar_lea.hbm %s2385_s7, 2048 }
 0x625   : > { %p1791_p9 = scmp.ne.s32.totalorder %s2334_s8, %s1790_s29  ;;  %p1795_p7 = scmp.lt.u32.totalorder %s2334_s8, %s2385_s7 }
 0x626   : > { %p1796_p12 = scmp.lt.u32.totalorder %s1794_s20, %s1790_s29  ;;  %p1798_p2 = scmp.lt.u32.totalorder %s1790_s29, %s2334_s8 }
 0x627   : > { %p1792_p13 = pnand %p1791_p9, %p2063_p5 }
 0x628   : > { %p1797_p1 = por %p1796_p12, %p1795_p7 }
 0x629   : > { %p1793_p11 = pneg %p1792_p13 }
 0x62a   : > { %p1799_p4 = por %p1798_p2, %p1797_p1 }
 0x62c   : > { %p1800_p0 = pnand %p1799_p4, %p1793_p11 }
 0x62e   : > { %1803 = shalt.err (!%p1800_p0)
}
 0x62f   : > { %s1867_s21 = smov 256   ;;  %s1868_s10 = smov 16  }
 0x630   : > { %1505 = dma.vmem_to_hbm [thread:$0]  (%p2063_p5), %s2329_s4, 1024, %s2334_s8, %s1285_s13, %s1867_s21, %s1867_s21, %s1868_s10  }
 0x631 PF: > { %s2411_s11 = sld [smem:[#allocation17_spill]]  ;;  %s1313_s9 = sand.u32 1, %s1842_s24  }
 0x632   : > { %p2413_p6 = scmp.ge.s32.totalorder %s1854_s27, 2  ;;  %s1314_s30 = scalar_lea.sflag [#allocation4], %s1313_s9 }
 0x637   : > { %p2412_p8 = scmp.ne.s32.totalorder %s2411_s11, 0 }
 0x639   : > { %p1525_p10 = pnand %p2413_p6, %p2412_p8 }
 0x63b   : > { %1837 = dma.done.wait (!%p1525_p10), %s1314_s30, 1024  }
 0x63c   : > { %1839 = vsyncadd (!%p1525_p10), %s1314_s30, 4294966272  ;;  %p24_p3 = scmp.ge.s32.totalorder %s2049_s12, 4   ;;  %s2414_s24 = smov %s1846_s25 }
 0x63d   : > { %s2415_s25 = smov %s1850_s26  ;;  %s2416_s26 = smov %s2059_s18 }
 0x63e   : > { %s2417_s27 = smov %s2049_s12  ;;  %26 = sbr.rel (!%p24_p3) target bundleno = 12 (0xc), region = 118 }
 0x645   :  { %1319 = vsyncpa [#allocation3], 1 }
 0x646   :  { %1321 = vsyncpa [#allocation3 + $0x1], 1 }
 0x647   :  { %1322 = vsyncpa [#allocation6], 1 }
 0x648   :  { %1324 = vsyncpa [#allocation6 + $0x1], 1 }
 0x649   :  { %1325 = vsyncpa [#allocation9], 1 }
 0x64a   :  { %1326 = vsyncpa [#allocation4], 1 }
 0x64b   :  { %1328 = vsyncpa [#allocation4 + $0x1], 1 }

</bundles_post_ra>
